<compile_context>
chip_gen: v7x
topology: tpu7x:2x2x1
jax: 0.10.0
libtpu: 0.0.40
codegen_flags: <defaults>
</compile_context>

<pallas_src>
import math

import jax
import jax.numpy as jnp
from jax.experimental import pallas as pl
from jax.experimental.pallas import tpu as pltpu


def _residual_block_kernel(x_ref, c_ref, d_ref, xh_ref, dh_ref,
                           wc_ref, bc_ref, wd_ref, bd_ref,
                           wk_ref, bk_ref, wp_ref, bp_ref,
                           out_ref, skip_ref):
    # Per grid step (b, i):
    #   x_ref:  (1, C,  Tt)    c_ref: (1, Cc, Tt)    d_ref: (1, C, Tt)
    #   xh_ref: (1, 1, C, 2*hw)  dh_ref: (1, 1, C, 2*hw)   (left|right halo columns)
    #   wc: (2C, Cc)  bc: (2C, 1)   wd: (C, C)  bd: (C, 1)
    #   wk: (2C, K*C) bk: (2C, 1)   wp: (2C, C) bp: (2C, 1)
    f32 = jnp.float32
    _, C, Tt = x_ref.shape
    KC = wk_ref.shape[1]
    K = KC // C
    pad = K // 2
    hw = xh_ref.shape[-1] // 2
    cdt = x_ref.dtype            # storage / MXU dtype (f32 or bf16); accumulation is f32

    x = x_ref[0]                 # (C, Tt)
    cond = c_ref[0]              # (Cc, Tt)
    diff = d_ref[0]              # (C, Tt)

    # ---- 1x1 convs: channel-contraction matmuls (f32 accumulation on the MXU) ----
    cond_o = (jnp.dot(wc_ref[...], cond, preferred_element_type=f32)
              + bc_ref[...].astype(f32))                          # (2C, Tt)
    diff_o = (jnp.dot(wd_ref[...], diff, preferred_element_type=f32)
              + bd_ref[...].astype(f32))                          # (C, Tt)
    h = x.astype(f32) + diff_o                                    # (C, Tt), f32

    # ---- K-tap "same"-padded conv folded into ONE matmul with K*C contraction ----
    # Build the K time-shifted copies of h using the per-tile halo columns, stack them
    # along sublanes and contract against the pre-flattened (2C, K*C) conv weight.
    h_c = h.astype(cdt)
    if pad > 0:
        ti = pl.program_id(1)
        nt = pl.num_programs(1)
        xh = xh_ref[0, 0]                                         # (C, 2*hw)
        dh = dh_ref[0, 0]
        # halo of h = x_halo + diffusion-conv(diff_halo); zero it at sequence boundaries
        # (the conv zero-pads h, not h + bias).
        h_hal = (xh.astype(f32)
                 + jnp.dot(wd_ref[...], dh, preferred_element_type=f32)
                 + bd_ref[...].astype(f32))                       # (C, 2*hw)
        lmask = (ti > 0).astype(f32)
        rmask = (ti < nt - 1).astype(f32)
        hl = (h_hal[:, :pad] * lmask).astype(cdt)                 # (C, pad)
        hr = (h_hal[:, hw:hw + pad] * rmask).astype(cdt)          # (C, pad)

    rows = []
    for j in range(K):                   # K is a small static int -> unrolled
        off = j - pad                    # shifted_j[:, t] = h_global[:, t + off]
        if off < 0:
            rows.append(jnp.concatenate([hl[:, pad + off:], h_c[:, :Tt + off]], axis=1))
        elif off > 0:
            rows.append(jnp.concatenate([h_c[:, off:], hr[:, :off]], axis=1))
        else:
            rows.append(h_c)
    stacked = rows[0] if K == 1 else jnp.concatenate(rows, axis=0)    # (K*C, Tt)

    y = (jnp.dot(wk_ref[...], stacked, preferred_element_type=f32)
         + bk_ref[...].astype(f32) + cond_o)                      # (2C, Tt)

    # ---- gated activation (f32 on VPU/EUP) ----
    g = jnp.tanh(y[:C]) * jax.nn.sigmoid(y[C:])                   # (C, Tt)

    # ---- projection (1x1 conv) + residual / skip split (sublane-aligned) ----
    z = (jnp.dot(wp_ref[...], g.astype(cdt), preferred_element_type=f32)
         + bp_ref[...].astype(f32))                               # (2C, Tt)

    inv_sqrt2 = f32(1.0 / math.sqrt(2.0))
    out_ref[0] = ((z[:C] + x.astype(f32)) * inv_sqrt2).astype(out_ref.dtype)
    skip_ref[0] = z[C:].astype(skip_ref.dtype)


def residual_block(x, conditions, diffusions, params, *, t_tile=None):
    """x: [B, C, T], conditions: [B, Cc, T], diffusions: [B, C, T]  (PyTorch NCL).

    Returns (out, skips), each [B, C, T].  Works for f32 or bf16 storage (matmuls run in
    the storage dtype with f32 accumulation).
    """
    wc, bc, wd, bd, wk, bk, wp, bp = params
    B, C, T = x.shape
    Cc = conditions.shape[1]
    K = wk.shape[0]                       # wk stored as (K, 2C, C)
    assert K % 2 == 1, "kernel_size must be odd for 'same' padding"
    pad = K // 2
    hw = max(pad, 1)

    if t_tile is None:                    # lane-dense tiles; re-derive for long T / v7x VMEM
        for cand in (256, 128):
            if T % cand == 0:
                t_tile = cand
                break
        else:
            t_tile = T
    assert T % t_tile == 0
    nt = T // t_tile

    # Conv weight (K, 2C, C) -> matmul-ready (2C, K*C) once (taps-major columns).
    wk_flat = jnp.transpose(wk, (1, 0, 2)).reshape(2 * C, K * C)

    # Tiny per-tile halo slabs so T-tiles need no overlapping blocks or extra full reads:
    # (B, nt, C, 2*hw) = [left | right] boundary columns of each tile (zeros at sequence
    # edges).  Size ~ B*nt*C*2*pad elements -> negligible HBM traffic.
    def _halos(a):
        Ca = a.shape[1]
        if pad == 0:
            return jnp.zeros((B, nt, Ca, 2 * hw), a.dtype)
        ar = a.reshape(B, Ca, nt, t_tile)
        z = jnp.zeros((B, Ca, 1, pad), a.dtype)
        left = jnp.concatenate([z, ar[:, :, :-1, t_tile - pad:]], axis=2)
        right = jnp.concatenate([ar[:, :, 1:, :pad], z], axis=2)
        return jnp.transpose(jnp.concatenate([left, right], axis=3), (0, 2, 1, 3))

    x_hal = _halos(x)
    d_hal = _halos(diffusions)

    # Weights: full-array blocks with constant index maps -> DMA'd once, VMEM-resident
    # across the whole grid (they are never re-fetched since the block index never changes).
    def _full(a):
        return pl.BlockSpec(a.shape, lambda b, i, _nd=a.ndim: (0,) * _nd)

    out, skips = pl.pallas_call(
        _residual_block_kernel,
        out_shape=(jax.ShapeDtypeStruct((B, C, T), x.dtype),
                   jax.ShapeDtypeStruct((B, C, T), x.dtype)),
        grid_spec=pltpu.PrefetchScalarGridSpec(
            num_scalar_prefetch=0,
            grid=(B, nt),
            in_specs=[
                pl.BlockSpec((1, C, t_tile), lambda b, i: (b, 0, i)),
                pl.BlockSpec((1, Cc, t_tile), lambda b, i: (b, 0, i)),
                pl.BlockSpec((1, C, t_tile), lambda b, i: (b, 0, i)),
                pl.BlockSpec((1, 1, C, 2 * hw), lambda b, i: (b, i, 0, 0)),
                pl.BlockSpec((1, 1, C, 2 * hw), lambda b, i: (b, i, 0, 0)),
                _full(wc), _full(bc), _full(wd), _full(bd),
                _full(wk_flat), _full(bk), _full(wp), _full(bp),
            ],
            out_specs=[
                pl.BlockSpec((1, C, t_tile), lambda b, i: (b, 0, i)),
                pl.BlockSpec((1, C, t_tile), lambda b, i: (b, 0, i)),
            ],
        ),
        compiler_params=pltpu.CompilerParams(
            dimension_semantics=("parallel", "parallel"),
            vmem_limit_bytes=32 * 1024 * 1024,
        ),
    )(x, conditions, diffusions, x_hal, d_hal,
      wc, bc, wd, bd, wk_flat, bk, wp, bp)
    return out, skips


def reference_jax(x, conditions, diffusions, params):
    """Pure-JAX (f32) reference replicating PyTorch Residual_Block.forward semantics."""
    wc, bc, wd, bd, wk, bk, wp, bp = [p.astype(jnp.float32) for p in params]
    xf = x.astype(jnp.float32)
    cf = conditions.astype(jnp.float32)
    df = diffusions.astype(jnp.float32)
    B, C, T = xf.shape
    K = wk.shape[0]
    pad = K // 2

    cond_o = jnp.einsum('oc,bct->bot', wc, cf) + bc[None]
    diff_o = jnp.einsum('oc,bct->bot', wd, df) + bd[None]
    h = xf + diff_o
    h_pad = jnp.pad(h, ((0, 0), (0, 0), (pad, pad)))
    y = cond_o + bk[None]
    for j in range(K):
        y = y + jnp.einsum('oc,bct->bot', wk[j], h_pad[:, :, j:j + T])
    g = jnp.tanh(y[:, :C]) * jax.nn.sigmoid(y[:, C:])
    z = jnp.einsum('oc,bct->bot', wp, g) + bp[None]
    out = (z[:, :C] + xf) / math.sqrt(2.0)
    return out, z[:, C:]


def init_params(key, in_channels, condition_channels, kernel_size):
    """Weights in kernel-ready layout: 1x1 convs as (out, in) (== PyTorch weight[:, :, 0]),
    the K-tap conv as (K, out, in) (== PyTorch weight transposed (2, 0, 1))."""
    C, Cc, K = in_channels, condition_channels, kernel_size
    ks = jax.random.split(key, 8)
    s = 0.1
    wc = s * jax.random.normal(ks[0], (2 * C, Cc), jnp.float32)
    bc = s * jax.random.normal(ks[1], (2 * C, 1), jnp.float32)
    wd = s * jax.random.normal(ks[2], (C, C), jnp.float32)
    bd = s * jax.random.normal(ks[3], (C, 1), jnp.float32)
    wk = s * jax.random.normal(ks[4], (K, 2 * C, C), jnp.float32)
    bk = s * jax.random.normal(ks[5], (2 * C, 1), jnp.float32)
    wp = s * jax.random.normal(ks[6], (2 * C, C), jnp.float32)
    bp = s * jax.random.normal(ks[7], (2 * C, 1), jnp.float32)
    return (wc, bc, wd, bd, wk, bk, wp, bp)


if __name__ == "__main__":
    B = 2       # batch
    C = 16      # in_channels
    Cc = 32     # condition_channels
    T = 512     # sequence length (-> two lane-dense 256-wide time tiles per batch)
    K = 3       # kernel_size

    key = jax.random.PRNGKey(0)
    kx, kc, kd, kp = jax.random.split(key, 4)

    x = jax.random.normal(kx, (B, C, T), jnp.float32)            # NCL like PyTorch
    conditions = jax.random.normal(kc, (B, Cc, T), jnp.float32)
    diffusions = jax.random.normal(kd, (B, C, T), jnp.float32)
    params = init_params(kp, C, Cc, K)

    # ---- f32 storage path ----
    out, skips = residual_block(x, conditions, diffusions, params)
    out, skips = jax.block_until_ready((out, skips))
    ref_out, ref_skips = reference_jax(x, conditions, diffusions, params)
    assert jnp.allclose(out, ref_out, rtol=2e-3, atol=2e-3), "f32 out mismatch"
    assert jnp.allclose(skips, ref_skips, rtol=2e-3, atol=2e-3), "f32 skips mismatch"

    # ---- bf16 storage path (halves HBM/VMEM, bf16 MXU with f32 accumulation) ----
    bf16 = jnp.bfloat16
    x_b = x.astype(bf16)
    cond_b = conditions.astype(bf16)
    diff_b = diffusions.astype(bf16)
    params_b = tuple(p.astype(bf16) for p in params)
    out_b, skips_b = residual_block(x_b, cond_b, diff_b, params_b)
    out_b, skips_b = jax.block_until_ready((out_b, skips_b))
    ref_out_b, ref_skips_b = reference_jax(x_b, cond_b, diff_b, params_b)
    assert jnp.allclose(out_b.astype(jnp.float32), ref_out_b, rtol=5e-2, atol=5e-2), \
        "bf16 out mismatch"
    assert jnp.allclose(skips_b.astype(jnp.float32), ref_skips_b, rtol=5e-2, atol=5e-2), \
        "bf16 skips mismatch"

    print("KERNEL_OK")
</pallas_src>

<mosaic_0001>
module attributes {stable_mosaic.version = 11 : i64} {
  func.func @_residual_block_kernel(%arg0: i32, %arg1: i32, %arg2: memref<1x16x256xf32, #tpu.memory_space<vmem>>, %arg3: memref<1x32x256xf32, #tpu.memory_space<vmem>>, %arg4: memref<1x16x256xf32, #tpu.memory_space<vmem>>, %arg5: memref<1x1x16x2xf32, #tpu.memory_space<vmem>>, %arg6: memref<1x1x16x2xf32, #tpu.memory_space<vmem>>, %arg7: memref<32x32xf32, #tpu.memory_space<vmem>>, %arg8: memref<32x1xf32, #tpu.memory_space<vmem>>, %arg9: memref<16x16xf32, #tpu.memory_space<vmem>>, %arg10: memref<16x1xf32, #tpu.memory_space<vmem>>, %arg11: memref<32x48xf32, #tpu.memory_space<vmem>>, %arg12: memref<32x1xf32, #tpu.memory_space<vmem>>, %arg13: memref<32x16xf32, #tpu.memory_space<vmem>>, %arg14: memref<32x1xf32, #tpu.memory_space<vmem>>, %arg15: memref<1x16x256xf32, #tpu.memory_space<vmem>>, %arg16: memref<1x16x256xf32, #tpu.memory_space<vmem>>) attributes {dimension_semantics = [#tpu.dimension_semantics<parallel>, #tpu.dimension_semantics<parallel>], iteration_bounds = array<i64: 2, 2>, scalar_prefetch = 0 : i64, scratch_operands = 0 : i64, tpu.core_type = #tpu.core_type<tc>, window_params = [{transform_indices = @transform_0, window_bounds = array<i64: 1, 16, 256>}, {transform_indices = @transform_1, window_bounds = array<i64: 1, 32, 256>}, {transform_indices = @transform_2, window_bounds = array<i64: 1, 16, 256>}, {transform_indices = @transform_3, window_bounds = array<i64: 1, 1, 16, 2>}, {transform_indices = @transform_4, window_bounds = array<i64: 1, 1, 16, 2>}, {pipeline_mode = #tpu.pipeline_mode<synchronous>, transform_indices = @transform_5, window_bounds = array<i64: 32, 32>}, {pipeline_mode = #tpu.pipeline_mode<synchronous>, transform_indices = @transform_6, window_bounds = array<i64: 32, 1>}, {pipeline_mode = #tpu.pipeline_mode<synchronous>, transform_indices = @transform_7, window_bounds = array<i64: 16, 16>}, {pipeline_mode = #tpu.pipeline_mode<synchronous>, transform_indices = @transform_8, window_bounds = array<i64: 16, 1>}, {pipeline_mode = #tpu.pipeline_mode<synchronous>, transform_indices = @transform_9, window_bounds = array<i64: 32, 48>}, {pipeline_mode = #tpu.pipeline_mode<synchronous>, transform_indices = @transform_10, window_bounds = array<i64: 32, 1>}, {pipeline_mode = #tpu.pipeline_mode<synchronous>, transform_indices = @transform_11, window_bounds = array<i64: 32, 16>}, {pipeline_mode = #tpu.pipeline_mode<synchronous>, transform_indices = @transform_12, window_bounds = array<i64: 32, 1>}, {transform_indices = @transform_13, window_bounds = array<i64: 1, 16, 256>}, {transform_indices = @transform_14, window_bounds = array<i64: 1, 16, 256>}]} {
    %c0 = arith.constant 0 : index
    %c0_0 = arith.constant 0 : index
    %c0_1 = arith.constant 0 : index
    %0 = vector.load %arg2[%c0, %c0_0, %c0_1] : memref<1x16x256xf32, #tpu.memory_space<vmem>>, vector<1x16x256xf32>
    %1 = vector.shape_cast %0 : vector<1x16x256xf32> to vector<16x256xf32>
    %c0_2 = arith.constant 0 : index
    %c0_3 = arith.constant 0 : index
    %c0_4 = arith.constant 0 : index
    %2 = vector.load %arg3[%c0_2, %c0_3, %c0_4] : memref<1x32x256xf32, #tpu.memory_space<vmem>>, vector<1x32x256xf32>
    %3 = vector.shape_cast %2 : vector<1x32x256xf32> to vector<32x256xf32>
    %c0_5 = arith.constant 0 : index
    %c0_6 = arith.constant 0 : index
    %c0_7 = arith.constant 0 : index
    %4 = vector.load %arg4[%c0_5, %c0_6, %c0_7] : memref<1x16x256xf32, #tpu.memory_space<vmem>>, vector<1x16x256xf32>
    %5 = vector.shape_cast %4 : vector<1x16x256xf32> to vector<16x256xf32>
    %c0_8 = arith.constant 0 : index
    %c0_9 = arith.constant 0 : index
    %6 = vector.load %arg7[%c0_8, %c0_9] : memref<32x32xf32, #tpu.memory_space<vmem>>, vector<32x32xf32>
    %cst = arith.constant dense<0.000000e+00> : vector<32x256xf32>
    %7 = tpu.matmul %6, %3, %cst {dimension_numbers = #tpu.dot_dimension_numbers<[1], [0], [0], [1], [0, 0, 1, 1], [], []>} : vector<32x32xf32>, vector<32x256xf32>, vector<32x256xf32> -> vector<32x256xf32>
    %c0_10 = arith.constant 0 : index
    %c0_11 = arith.constant 0 : index
    %8 = vector.load %arg8[%c0_10, %c0_11] : memref<32x1xf32, #tpu.memory_space<vmem>>, vector<32x1xf32>
    %9 = vector.broadcast %8 : vector<32x1xf32> to vector<32x256xf32>
    %10 = arith.addf %7, %9 : vector<32x256xf32>
    %c0_12 = arith.constant 0 : index
    %c0_13 = arith.constant 0 : index
    %11 = vector.load %arg9[%c0_12, %c0_13] : memref<16x16xf32, #tpu.memory_space<vmem>>, vector<16x16xf32>
    %cst_14 = arith.constant dense<0.000000e+00> : vector<16x256xf32>
    %12 = tpu.matmul %11, %5, %cst_14 {dimension_numbers = #tpu.dot_dimension_numbers<[1], [0], [0], [1], [0, 0, 1, 1], [], []>} : vector<16x16xf32>, vector<16x256xf32>, vector<16x256xf32> -> vector<16x256xf32>
    %c0_15 = arith.constant 0 : index
    %c0_16 = arith.constant 0 : index
    %13 = vector.load %arg10[%c0_15, %c0_16] : memref<16x1xf32, #tpu.memory_space<vmem>>, vector<16x1xf32>
    %14 = vector.broadcast %13 : vector<16x1xf32> to vector<16x256xf32>
    %15 = arith.addf %12, %14 : vector<16x256xf32>
    %16 = arith.addf %1, %15 : vector<16x256xf32>
    %c0_17 = arith.constant 0 : index
    %c0_18 = arith.constant 0 : index
    %c0_19 = arith.constant 0 : index
    %c0_20 = arith.constant 0 : index
    %17 = vector.load %arg5[%c0_17, %c0_18, %c0_19, %c0_20] : memref<1x1x16x2xf32, #tpu.memory_space<vmem>>, vector<1x1x16x2xf32>
    %18 = vector.shape_cast %17 : vector<1x1x16x2xf32> to vector<16x2xf32>
    %c0_21 = arith.constant 0 : index
    %c0_22 = arith.constant 0 : index
    %c0_23 = arith.constant 0 : index
    %c0_24 = arith.constant 0 : index
    %19 = vector.load %arg6[%c0_21, %c0_22, %c0_23, %c0_24] : memref<1x1x16x2xf32, #tpu.memory_space<vmem>>, vector<1x1x16x2xf32>
    %20 = vector.shape_cast %19 : vector<1x1x16x2xf32> to vector<16x2xf32>
    %c0_25 = arith.constant 0 : index
    %c0_26 = arith.constant 0 : index
    %21 = vector.load %arg9[%c0_25, %c0_26] : memref<16x16xf32, #tpu.memory_space<vmem>>, vector<16x16xf32>
    %cst_27 = arith.constant dense<0.000000e+00> : vector<16x2xf32>
    %22 = tpu.matmul %21, %20, %cst_27 {dimension_numbers = #tpu.dot_dimension_numbers<[1], [0], [0], [1], [0, 0, 1, 1], [], []>} : vector<16x16xf32>, vector<16x2xf32>, vector<16x2xf32> -> vector<16x2xf32>
    %23 = arith.addf %18, %22 : vector<16x2xf32>
    %c0_28 = arith.constant 0 : index
    %c0_29 = arith.constant 0 : index
    %24 = vector.load %arg10[%c0_28, %c0_29] : memref<16x1xf32, #tpu.memory_space<vmem>>, vector<16x1xf32>
    %25 = vector.broadcast %24 : vector<16x1xf32> to vector<16x2xf32>
    %26 = arith.addf %23, %25 : vector<16x2xf32>
    %c0_i32 = arith.constant 0 : i32
    %27 = arith.cmpi sgt, %arg1, %c0_i32 : i32
    %28 = arith.extui %27 : i1 to i32
    %29 = arith.sitofp %28 : i32 to f32
    %c1_i32 = arith.constant 1 : i32
    %30 = arith.cmpi slt, %arg1, %c1_i32 : i32
    %31 = arith.extui %30 : i1 to i32
    %32 = arith.sitofp %31 : i32 to f32
    %33 = vector.extract_strided_slice %26 {offsets = [0, 0], sizes = [16, 1], strides = [1, 1]} : vector<16x2xf32> to vector<16x1xf32>
    %34 = vector.broadcast %29 : f32 to vector<16x1xf32>
    %35 = arith.mulf %33, %34 : vector<16x1xf32>
    %36 = vector.extract_strided_slice %26 {offsets = [0, 1], sizes = [16, 1], strides = [1, 1]} : vector<16x2xf32> to vector<16x1xf32>
    %37 = vector.broadcast %32 : f32 to vector<16x1xf32>
    %38 = arith.mulf %36, %37 : vector<16x1xf32>
    %39 = vector.extract_strided_slice %16 {offsets = [0, 0], sizes = [16, 255], strides = [1, 1]} : vector<16x256xf32> to vector<16x255xf32>
    %40 = tpu.concatenate %35, %39 in 1 : vector<16x1xf32>, vector<16x255xf32> -> vector<16x256xf32>
    %41 = vector.extract_strided_slice %16 {offsets = [0, 1], sizes = [16, 255], strides = [1, 1]} : vector<16x256xf32> to vector<16x255xf32>
    %42 = tpu.concatenate %41, %38 in 1 : vector<16x255xf32>, vector<16x1xf32> -> vector<16x256xf32>
    %43 = tpu.concatenate %40, %16, %42 in 0 : vector<16x256xf32>, vector<16x256xf32>, vector<16x256xf32> -> vector<48x256xf32>
    %c0_30 = arith.constant 0 : index
    %c0_31 = arith.constant 0 : index
    %44 = vector.load %arg11[%c0_30, %c0_31] : memref<32x48xf32, #tpu.memory_space<vmem>>, vector<32x48xf32>
    %cst_32 = arith.constant dense<0.000000e+00> : vector<32x256xf32>
    %45 = tpu.matmul %44, %43, %cst_32 {dimension_numbers = #tpu.dot_dimension_numbers<[1], [0], [0], [1], [0, 0, 1, 1], [], []>} : vector<32x48xf32>, vector<48x256xf32>, vector<32x256xf32> -> vector<32x256xf32>
    %c0_33 = arith.constant 0 : index
    %c0_34 = arith.constant 0 : index
    %46 = vector.load %arg12[%c0_33, %c0_34] : memref<32x1xf32, #tpu.memory_space<vmem>>, vector<32x1xf32>
    %47 = vector.broadcast %46 : vector<32x1xf32> to vector<32x256xf32>
    %48 = arith.addf %45, %47 : vector<32x256xf32>
    %49 = arith.addf %48, %10 : vector<32x256xf32>
    %50 = vector.extract_strided_slice %49 {offsets = [0, 0], sizes = [16, 256], strides = [1, 1]} : vector<32x256xf32> to vector<16x256xf32>
    %51 = math.tanh %50 : vector<16x256xf32>
    %52 = vector.extract_strided_slice %49 {offsets = [16, 0], sizes = [16, 256], strides = [1, 1]} : vector<32x256xf32> to vector<16x256xf32>
    %53 = arith.negf %52 : vector<16x256xf32>
    %54 = math.exp %53 : vector<16x256xf32>
    %cst_35 = arith.constant 1.000000e+00 : f32
    %55 = vector.broadcast %cst_35 : f32 to vector<16x256xf32>
    %56 = arith.addf %55, %54 : vector<16x256xf32>
    %57 = arith.divf %55, %56 : vector<16x256xf32>
    %58 = arith.mulf %51, %57 : vector<16x256xf32>
    %c0_36 = arith.constant 0 : index
    %c0_37 = arith.constant 0 : index
    %59 = vector.load %arg13[%c0_36, %c0_37] : memref<32x16xf32, #tpu.memory_space<vmem>>, vector<32x16xf32>
    %cst_38 = arith.constant dense<0.000000e+00> : vector<32x256xf32>
    %60 = tpu.matmul %59, %58, %cst_38 {dimension_numbers = #tpu.dot_dimension_numbers<[1], [0], [0], [1], [0, 0, 1, 1], [], []>} : vector<32x16xf32>, vector<16x256xf32>, vector<32x256xf32> -> vector<32x256xf32>
    %c0_39 = arith.constant 0 : index
    %c0_40 = arith.constant 0 : index
    %61 = vector.load %arg14[%c0_39, %c0_40] : memref<32x1xf32, #tpu.memory_space<vmem>>, vector<32x1xf32>
    %62 = vector.broadcast %61 : vector<32x1xf32> to vector<32x256xf32>
    %63 = arith.addf %60, %62 : vector<32x256xf32>
    %64 = vector.extract_strided_slice %63 {offsets = [0, 0], sizes = [16, 256], strides = [1, 1]} : vector<32x256xf32> to vector<16x256xf32>
    %65 = arith.addf %64, %1 : vector<16x256xf32>
    %cst_41 = arith.constant 0.707106769 : f32
    %66 = vector.broadcast %cst_41 : f32 to vector<16x256xf32>
    %67 = arith.mulf %65, %66 : vector<16x256xf32>
    %c0_42 = arith.constant 0 : index
    %c0_43 = arith.constant 0 : index
    %c0_44 = arith.constant 0 : index
    %68 = vector.load %arg15[%c0_42, %c0_43, %c0_44] : memref<1x16x256xf32, #tpu.memory_space<vmem>>, vector<1x16x256xf32>
    %69 = vector.shape_cast %68 : vector<1x16x256xf32> to vector<16x256xf32>
    %70 = vector.shape_cast %67 : vector<16x256xf32> to vector<1x16x256xf32>
    tpu.vector_store %arg15[%c0_42, %c0_43, %c0_44], %70 {strides = array<i32>} : memref<1x16x256xf32, #tpu.memory_space<vmem>>, vector<1x16x256xf32>,
    %71 = vector.extract_strided_slice %63 {offsets = [16, 0], sizes = [16, 256], strides = [1, 1]} : vector<32x256xf32> to vector<16x256xf32>
    %c0_45 = arith.constant 0 : index
    %c0_46 = arith.constant 0 : index
    %c0_47 = arith.constant 0 : index
    %72 = vector.load %arg16[%c0_45, %c0_46, %c0_47] : memref<1x16x256xf32, #tpu.memory_space<vmem>>, vector<1x16x256xf32>
    %73 = vector.shape_cast %72 : vector<1x16x256xf32> to vector<16x256xf32>
    %74 = vector.shape_cast %71 : vector<16x256xf32> to vector<1x16x256xf32>
    tpu.vector_store %arg16[%c0_45, %c0_46, %c0_47], %74 {strides = array<i32>} : memref<1x16x256xf32, #tpu.memory_space<vmem>>, vector<1x16x256xf32>,
    return
  }
  func.func @transform_0(%arg0: i32, %arg1: i32) -> (i32, i32, i32) {
    %c0_i32 = arith.constant 0 : i32
    %c0_i32_0 = arith.constant 0 : i32
    return %arg0, %c0_i32, %arg1 : i32, i32, i32
  }
  func.func @transform_1(%arg0: i32, %arg1: i32) -> (i32, i32, i32) {
    %c0_i32 = arith.constant 0 : i32
    %c0_i32_0 = arith.constant 0 : i32
    return %arg0, %c0_i32, %arg1 : i32, i32, i32
  }
  func.func @transform_2(%arg0: i32, %arg1: i32) -> (i32, i32, i32) {
    %c0_i32 = arith.constant 0 : i32
    %c0_i32_0 = arith.constant 0 : i32
    return %arg0, %c0_i32, %arg1 : i32, i32, i32
  }
  func.func @transform_3(%arg0: i32, %arg1: i32) -> (i32, i32, i32, i32) {
    %c0_i32 = arith.constant 0 : i32
    %c0_i32_0 = arith.constant 0 : i32
    %c0_i32_1 = arith.constant 0 : i32
    return %arg0, %arg1, %c0_i32, %c0_i32_0 : i32, i32, i32, i32
  }
  func.func @transform_4(%arg0: i32, %arg1: i32) -> (i32, i32, i32, i32) {
    %c0_i32 = arith.constant 0 : i32
    %c0_i32_0 = arith.constant 0 : i32
    %c0_i32_1 = arith.constant 0 : i32
    return %arg0, %arg1, %c0_i32, %c0_i32_0 : i32, i32, i32, i32
  }
  func.func @transform_5(%arg0: i32, %arg1: i32) -> (i32, i32) {
    %c0_i32 = arith.constant 0 : i32
    %c0_i32_0 = arith.constant 0 : i32
    %c0_i32_1 = arith.constant 0 : i32
    return %c0_i32, %c0_i32_0 : i32, i32
  }
  func.func @transform_6(%arg0: i32, %arg1: i32) -> (i32, i32) {
    %c0_i32 = arith.constant 0 : i32
    %c0_i32_0 = arith.constant 0 : i32
    %c0_i32_1 = arith.constant 0 : i32
    return %c0_i32, %c0_i32_0 : i32, i32
  }
  func.func @transform_7(%arg0: i32, %arg1: i32) -> (i32, i32) {
    %c0_i32 = arith.constant 0 : i32
    %c0_i32_0 = arith.constant 0 : i32
    %c0_i32_1 = arith.constant 0 : i32
    return %c0_i32, %c0_i32_0 : i32, i32
  }
  func.func @transform_8(%arg0: i32, %arg1: i32) -> (i32, i32) {
    %c0_i32 = arith.constant 0 : i32
    %c0_i32_0 = arith.constant 0 : i32
    %c0_i32_1 = arith.constant 0 : i32
    return %c0_i32, %c0_i32_0 : i32, i32
  }
  func.func @transform_9(%arg0: i32, %arg1: i32) -> (i32, i32) {
    %c0_i32 = arith.constant 0 : i32
    %c0_i32_0 = arith.constant 0 : i32
    %c0_i32_1 = arith.constant 0 : i32
    return %c0_i32, %c0_i32_0 : i32, i32
  }
  func.func @transform_10(%arg0: i32, %arg1: i32) -> (i32, i32) {
    %c0_i32 = arith.constant 0 : i32
    %c0_i32_0 = arith.constant 0 : i32
    %c0_i32_1 = arith.constant 0 : i32
    return %c0_i32, %c0_i32_0 : i32, i32
  }
  func.func @transform_11(%arg0: i32, %arg1: i32) -> (i32, i32) {
    %c0_i32 = arith.constant 0 : i32
    %c0_i32_0 = arith.constant 0 : i32
    %c0_i32_1 = arith.constant 0 : i32
    return %c0_i32, %c0_i32_0 : i32, i32
  }
  func.func @transform_12(%arg0: i32, %arg1: i32) -> (i32, i32) {
    %c0_i32 = arith.constant 0 : i32
    %c0_i32_0 = arith.constant 0 : i32
    %c0_i32_1 = arith.constant 0 : i32
    return %c0_i32, %c0_i32_0 : i32, i32
  }
  func.func @transform_13(%arg0: i32, %arg1: i32) -> (i32, i32, i32) {
    %c0_i32 = arith.constant 0 : i32
    %c0_i32_0 = arith.constant 0 : i32
    return %arg0, %c0_i32, %arg1 : i32, i32, i32
  }
  func.func @transform_14(%arg0: i32, %arg1: i32) -> (i32, i32, i32) {
    %c0_i32 = arith.constant 0 : i32
    %c0_i32_0 = arith.constant 0 : i32
    return %arg0, %c0_i32, %arg1 : i32, i32, i32
  }
}

</mosaic_0001>

<bundles_post_ra>
// kernel: tpu_custom_call.1
= control target key start
LH: loop header
LB: loop body
LE: loop exit
PB: predicated region body
PF: predicated region fallthrough
CT: control target
= control target key end

     0   :  { %s2809_s0 = inlined_call_operand.hbm [shape: f32[2,16,512], index: 0, kind: input, shape index: {}]   ;;  %s2810_s1 = inlined_call_operand.vmem [shape: f32[2,32,512], index: 1, kind: input, shape index: {}]   ;;  %s2811_s2 = inlined_call_operand.hbm [shape: f32[2,16,512], index: 2, kind: input, shape index: {}]   ;;  %s2812_s3 = inlined_call_operand.vmem [shape: f32[2,2,16,2], index: 3, kind: input, shape index: {}]   ;;  %s2813_s4 = inlined_call_operand.vmem [shape: f32[2,2,16,2], index: 4, kind: input, shape index: {}]   ;;  %s2814_s5 = inlined_call_operand.vmem [shape: f32[32,32], index: 5, kind: input, shape index: {}]   ;;  %s2815_s6 = inlined_call_operand.vmem [shape: f32[32,1], index: 6, kind: input, shape index: {}]   ;;  %s2816_s7 = inlined_call_operand.hbm [shape: f32[16,16], index: 7, kind: input, shape index: {}]   ;;  %s2817_s8 = inlined_call_operand.vmem [shape: f32[16,1], index: 8, kind: input, shape index: {}]   ;;  %s2818_s9 = inlined_call_operand.vmem [shape: f32[32,48], index: 9, kind: input, shape index: {}]   ;;  %s2819_s10 = inlined_call_operand.vmem [shape: f32[32,1], index: 10, kind: input, shape index: {}]   ;;  %s2820_s11 = inlined_call_operand.vmem [shape: f32[32,16], index: 11, kind: input, shape index: {}]   ;;  %s2821_s12 = inlined_call_operand.vmem [shape: f32[32,1], index: 12, kind: input, shape index: {}]   ;;  %s2822_s13 = inlined_call_operand.hbm [shape: f32[2,16,512], index: 13, kind: output, shape index: {0}]   ;;  %s2823_s14 = inlined_call_operand.hbm [shape: f32[2,16,512], index: 14, kind: output, shape index: {1}]  }
   0x1   :  { %2850 = sst [smem:[#allocation24_spill]] %s2809_s0 }
   0x2   :  { %2851 = sst [smem:[#allocation25_spill]] %s2810_s1 }
   0x3   :  { %2852 = sst [smem:[#allocation26_spill]] %s2811_s2 }
   0x4   :  { %2853 = sst [smem:[#allocation27_spill]] %s2812_s3 }
   0x5   :  { %2854 = sst [smem:[#allocation28_spill]] %s2813_s4 }
   0x6   :  { %2855 = sst [smem:[#allocation29_spill]] %s2814_s5 }
   0x7   :  { %2856 = sst [smem:[#allocation30_spill]] %s2815_s6 }
   0x8   :  { %2857 = sst [smem:[#allocation31_spill]] %s2816_s7 }
   0x9   :  { %2858 = sst [smem:[#allocation32_spill]] %s2817_s8 }
   0xa   :  { %2859 = sst [smem:[#allocation33_spill]] %s2818_s9 }
   0xb   :  { %2860 = sst [smem:[#allocation34_spill]] %s2819_s10 }
   0xc   :  { %2861 = sst [smem:[#allocation35_spill]] %s2820_s11 }
   0xd   :  { %2862 = sst [smem:[#allocation36_spill]] %s2821_s12 }
   0xe   :  { %2863 = sst [smem:[#allocation37_spill]] %s2822_s13 }
   0xf   :  { %2864 = sst [smem:[#allocation38_spill]] %s2823_s14 }
  0x10   :  { %20 = vsyncpa [#allocation3], 0 }
  0x11   :  { %22 = vsyncpa [#allocation3 + $0x1], 0 }
  0x12   :  { %23 = vsyncpa [#allocation7], 0 }
  0x13   :  { %25 = vsyncpa [#allocation7 + $0x1], 0 }
  0x14   :  { %26 = vsyncpa [#allocation4], 0 }
  0x15   :  { %28 = vsyncpa [#allocation4 + $0x1], 0 }
  0x16   :  { %29 = vsyncpa [#allocation11], 0 }
  0x17   :  { %31 = vsyncpa [#allocation11 + $0x1], 0  ;;  %s2271_s29 = smov 0   ;;  %s2273_s30 = smov 0  }
  0x18   :  { %s2275_s15 = smov 0   ;;  %s2277_s16 = smov 0  }
  0x19   :  { %s2279_s17 = smov 0   ;;  %s2281_s18 = smov 0  }
  0x1a   :  { %s2283_s19 = smov 0   ;;  %s2285_s20 = smov 0  }
  0x1b LB: > { %2865 = sst [smem:[#allocation17_spill]] %s2148_s29  ;;  %s2312_s21 = sadd.s32 4294967295, %s2176_s20   ;;  %s2176_s20 = sphi %s2285_s20, %s37_s20   ;;  %s2172_s19 = sphi %s2283_s19, %s2919_s19   ;;  %s2168_s18 = sphi %s2281_s18, %s2918_s18   ;;  %s2164_s17 = sphi %s2279_s17, %s2917_s17   ;;  %s2160_s16 = sphi %s2277_s16, %s2916_s16   ;;  %s2156_s15 = sphi %s2275_s15, %s2911_s15   ;;  %s2152_s30 = sphi %s2273_s30, %s2915_s30   ;;  %s2148_s29 = sphi %s2271_s29, %s2914_s29  }
  0x1c   : > { %2866 = sst [smem:[#allocation18_spill]] %s2156_s15  ;;  %s1673_s22 = sadd.s32 4294967294, %s2176_s20  }
  0x1d   : > { %s46_s23 = sadd.s32 1, %s2168_s18  ;;  %s49_s24 = sadd.s32 1, %s2172_s19 }
  0x1e   : > { %p47_p0 = scmp.ge.s32.totalorder %s46_s23, 2  ;;  %s58_s25 = sadd.s32 1, %s2156_s15 }
  0x1f   : > { %p65_p1 = scmp.ne.s32.totalorder %s2156_s15, %s2152_s30  ;;  %p66_p2 = scmp.eq.s32.totalorder %s2176_s20, 0 }
  0x20   : > { %s2921_s23 = smov (%p47_p0, %s46_s23), 0  ;;  %s2923_s24 = smov (!%p47_p0, %s49_s24), %s2172_s19 }
  0x21   : > { %2867 = sst [smem:[#allocation19_spill]] %s2921_s23  ;;  %s54_s26 = ssub.s32 %s2168_s18, %s2921_s23 }
  0x22   : > { %p2326_p3 = por %p66_p2, %p65_p1  ;;  %p51_p4 = scmp.ge.s32.totalorder %s2923_s24, 2 }
  0x23   : > { %p71_p5 = scmp.ne.s32.totalorder %s2152_s30, %s2148_s29  ;;  %p2834_p6 = scmp.eq.s32.totalorder %s2312_s21, 0 }
  0x24   : > { %s2868_s27 = scalar_select %p2326_p3, 1, 0 }
  0x25   : > { %p377_p7 = scmp.eq.s32.totalorder %s2312_s21, 3  ;;  %s2925_s24 = smov (%p51_p4, %s2923_s24), 0 }
  0x26   : > { %2869 = sst [smem:[#allocation20_spill]] %s2925_s24  ;;  %p2338_p8 = por %p2834_p6, %p71_p5 }
  0x27   : > { %p2342_p9 = por %p377_p7, %p65_p1  ;;  %s53_s14 = ssub.s32 %s2172_s19, %s2925_s24 }
  0x28   : > { %s2870_s28 = scalar_select %p2338_p8, 1, 0 }
  0x29   : > { %s2871_s23 = scalar_select %p2342_p9, 1, 0 }
  0x2a   : > { %p383_p10 = scmp.eq.s32.totalorder %s1673_s22, 3  ;;  %s55_s13 = sor.u32 %s54_s26, %s53_s14 }
  0x2b   : > { %2872 = sst [smem:[#allocation21_spill]] %s2871_s23  ;;  %p1674_p11 = scmp.ge.s32.totalorder %s2176_s20, 1 }
  0x2c   : > { %p56_p12 = scmp.eq.s32.totalorder %s55_s13, 0  ;;  %p2349_p13 = por %p383_p10, %p71_p5 }
  0x2d   : > { %p418_p0 = scmp.lt.s32.totalorder %s2176_s20, 5  ;;  %s2178_s12 = smov [#allocation8]  }
  0x2e   : > { %s2873_s29 = scalar_select %p2349_p13, 1, 0 }
  0x2f   : > { %s2355_s11 = scalar_select %p56_p12, %s2156_s15, %s58_s25  }
  0x30   : > { %2874 = sst [smem:[#allocation22_spill]] %s2873_s29  ;;  %p2357_p2 = pnand %p1674_p11, %p418_p0 }
  0x31   : > { %2875 = sst [smem:[#allocation23_spill]] %s2355_s11  ;;  %s436_s10 = sshll.u32 %s2178_s12, 4  ;;  %s437_s10 = int_to_ptr.vmem [resolvable:$true] %s436_s10 }
  0x32   : > { %s2876_s9 = scalar_select %p2357_p2, 1, 0 }
  0x33   : > { %p1811_p1 = pneg %p2357_p2  ;;  %s2878_s7 = sld [smem:[#allocation31_spill]] }
  0x35   : > { %p2365_p4 = pnand %p1811_p1, %p2834_p6 }
  0x37   : > { %p1956_p7 = pneg %p2365_p4 }
  0x39   : > { %s1954_s25 = scalar_lea.hbm %s2878_s7, 256 }
  0x3a   : > { %p1955_p5 = scmp.ne.s32.totalorder %s2878_s7, %s1954_s25  ;;  %p1961_p12 = scmp.lt.u32.totalorder %s1954_s25, %s2878_s7 }
  0x3c   : > { %p1957_p10 = pnand %p1956_p7, %p1955_p5 }
  0x3e   : > { %p1958_p11 = pneg %p1957_p10 }
  0x40   : > { %p1963_p0 = pnand %p1961_p12, %p1958_p11 }
  0x42   : > { %1966 = shalt.err (!%p1963_p0)
}
  0x43   : > { %s1967_s29 = scalar_lea.vmem %s437_s10, 256  ;;  %p1975_p9 = scmp.lt.s32.totalorder %s437_s10, %s437_s10 }
  0x44   : > { %p1968_p1 = scmp.ne.s32.totalorder %s437_s10, %s1967_s29  ;;  %p1976_p8 = scmp.lt.s32.totalorder %s1967_s29, %s1967_s29 }
  0x46   : > { %p1970_p6 = pnand %p1968_p1, %p1956_p7  ;;  %p1977_p2 = por %p1976_p8, %p1975_p9 }
  0x48   : > { %p1971_p13 = pneg %p1970_p6 }
  0x4a   : > { %p1978_p3 = pnand %p1977_p2, %p1971_p13 }
  0x4c   : > { %1981 = shalt.err (!%p1978_p3)
}
  0x4d   : > { %s2179_s24 = smov 128   ;;  %s2180_s14 = smov 8  }
  0x4e   : > { %1814 = dma.hbm_to_vmem [thread:$0]  (!%p2365_p4), %s2878_s7, 256, %s437_s10, [#allocation7], %s2179_s24, %s2179_s24, %s2180_s14  }
  0x4f   : > { %p1676_p5 = scmp.ge.s32.totalorder %s2176_s20, 4 }
  0x50   : > { %s2387_s11 = sand.u32 (!%p1676_p5), 1, %s2156_s15   ;;  %s2840_s29 = sshll.u32 (!%p1676_p5), %s2168_s18, 1 }
  0x51   : > { %461 = sbr.rel (%p1676_p5) target bundleno = 156 (0x9c), region = 48  ;;  %s2841_s25 = sshll.u32 (!%p1676_p5), %s2387_s11, 5 }
  0x52   : > { %s1679_s13 = sshll.u32 (!%p1676_p5), %s2172_s19, 3  ;;  %s469_s10 = scalar_lea.vmem (!%p1676_p5), [#allocation2], %s2841_s25 }
  0x53   : > { %s2394_s12 = sadd.s32 (!%p1676_p5), %s1679_s13, %s2840_s29  ;;  %s478_s24 = sshll.u32 (!%p1676_p5), %s469_s10, 4  ;;  %s2399_s24 = int_to_ptr.vmem [resolvable:$true] %s478_s24 }
  0x54   : > { %s2846_s14 = sshll.u32 (!%p1676_p5), %s2394_s12, 7  ;;  %s2879_s0 = sld [smem:[#allocation24_spill]] (!%p1676_p5) }
  0x55   : > { %s466_s13 = scalar_lea.sflag (!%p1676_p5), [#allocation3], %s2387_s11  ;;  %p2880_p6 = scmp.ne.s32.totalorder (!%p1676_p5), %s2868_s27, 0 }
  0x5a   : > { %s2406_s7 = scalar_lea.hbm %s2879_s0, %s2846_s14  ;;  %s1986_s15 = scalar_lea.hbm %s2879_s0, 2048 }
  0x5b   : > { %s1982_s29 = scalar_lea.hbm %s2406_s7, 512  ;;  %p1987_p13 = scmp.lt.u32.totalorder %s2406_s7, %s2879_s0 }
  0x5c   : > { %p1983_p3 = scmp.ne.s32.totalorder %s2406_s7, %s1982_s29  ;;  %p1988_p2 = scmp.lt.u32.totalorder %s1986_s15, %s1982_s29 }
  0x5d   : > { %p1990_p7 = scmp.lt.u32.totalorder %s1982_s29, %s2406_s7 }
  0x5e   : > { %p1984_p8 = pnand %p1983_p3, %p2880_p6  ;;  %p1989_p4 = por %p1988_p2, %p1987_p13 }
  0x60   : > { %p1985_p9 = pneg %p1984_p8  ;;  %p1991_p10 = por %p1990_p7, %p1989_p4 }
  0x62   : > { %p1992_p11 = pnand %p1991_p10, %p1985_p9 }
  0x64   : > { %1995 = shalt.err (!%p1992_p11)
}
  0x65   : > { %s1996_s22 = scalar_lea.vmem %s2399_s24, 512  ;;  %s2181_s25 = smov [#allocation2]  }
  0x66   : > { %p1997_p12 = scmp.ne.s32.totalorder %s2399_s24, %s1996_s22  ;;  %s2000_s26 = sshll.u32 %s2181_s25, 4  ;;  %s2001_s26 = int_to_ptr.vmem [resolvable:$false] %s2000_s26 }
  0x67   : > { %s2002_s6 = scalar_lea.vmem %s2001_s26, 1024  ;;  %p2003_p5 = scmp.lt.s32.totalorder %s2399_s24, %s2001_s26 }
  0x68   : > { %p1998_p0 = pnand %p1997_p12, %p2880_p6  ;;  %p2004_p3 = scmp.lt.s32.totalorder %s2002_s6, %s1996_s22 }
  0x6a   : > { %p1999_p1 = pneg %p1998_p0  ;;  %p2005_p8 = por %p2004_p3, %p2003_p5 }
  0x6c   : > { %p2006_p13 = pnand %p2005_p8, %p1999_p1 }
  0x6e   : > { %2009 = shalt.err (!%p2006_p13)
}
  0x6f   : > { %s2182_s15 = smov 512   ;;  %s2183_s23 = smov 256  }
  0x70   : > { %s2184_s29 = smov 16   ;;  %487 = sbr.rel (!%p2880_p6) target bundleno = 127 (0x7f), region = 56 }
  0x71   : > { %1801 = dma.hbm_to_vmem [thread:$0]  (%p2880_p6), %s2406_s7, 512, %s2399_s24, %s466_s13, %s2182_s15, %s2183_s23, %s2184_s29  }
  0x72   : > { %s1681_s10 = sshll.u32 (%p2880_p6), %s2387_s11, 6  ;;  %s1683_s22 = sshll.u32 (%p2880_p6), %s2172_s19, 4 }
  0x73   : > { %s2881_s25 = sshll.u32 (%p2880_p6), %s2168_s18, 1  ;;  %s2882_s1 = sld [smem:[#allocation25_spill]] (%p2880_p6) }
  0x74   : > { %s494_s26 = sadd.s32 (%p2880_p6), %s1683_s22, %s2881_s25  ;;  %s491_s5 = scalar_lea.vmem (%p2880_p6), [#allocation5], %s1681_s10 }
  0x75   : > { %s1684_s6 = sshll.u32 (%p2880_p6), %s494_s26, 3 }
  0x79   : > { %s496_s3 = scalar_lea.vmem %s2882_s1, %s1684_s6 }
  0x7a   : > { %v509_v0 = vld [vmem:[%s496_s3] sm:$0xff]  ;;  %v511_v1 = vld [vmem:[%s496_s3 + $0x8] sm:$0xff] }
  0x7b   : > { %v513_v2 = vld [vmem:[%s496_s3 + $0x20] sm:$0xff]  ;;  %510 = vst [vmem:[%s491_s5] sm:$0xff] %v509_v0  ;;  %512 = vst [vmem:[%s491_s5 + $0x8] sm:$0xff] %v511_v1  ;;  %v515_v3 = vld [vmem:[%s496_s3 + $0x28] sm:$0xff] }
  0x7c   : > { %514 = vst [vmem:[%s491_s5 + $0x10] sm:$0xff] %v513_v2  ;;  %v517_v4 = vld [vmem:[%s496_s3 + $0x40] sm:$0xff]  ;;  %v519_v5 = vld [vmem:[%s496_s3 + $0x48] sm:$0xff]  ;;  %516 = vst [vmem:[%s491_s5 + $0x18] sm:$0xff] %v515_v3 }
  0x7d   : > { %518 = vst [vmem:[%s491_s5 + $0x20] sm:$0xff] %v517_v4  ;;  %520 = vst [vmem:[%s491_s5 + $0x28] sm:$0xff] %v519_v5  ;;  %v521_v6 = vld [vmem:[%s496_s3 + $0x60] sm:$0xff]  ;;  %v523_v7 = vld [vmem:[%s496_s3 + $0x68] sm:$0xff] }
  0x7e   : > { %522 = vst [vmem:[%s491_s5 + $0x30] sm:$0xff] %v521_v6  ;;  %524 = vst [vmem:[%s491_s5 + $0x38] sm:$0xff] %v523_v7 }
  0x7f PF: > { %s531_s0 = sand.u32 1, %s2176_s20   ;;  %s2883_s7 = sshll.u32 %s2394_s12, 7 }
  0x80   : > { %s2884_s2 = sld [smem:[#allocation26_spill]]  ;;  %s2885_s10 = sshll.u32 %s2387_s11, 5 }
  0x81   : > { %s535_s3 = scalar_lea.vmem [#allocation6], %s2885_s10  ;;  %s2456_s5 = scalar_lea.sflag [#allocation7], %s531_s0 }
  0x82   : > { %s544_s22 = sshll.u32 %s535_s3, 4  ;;  %p2886_p9 = scmp.ne.s32.totalorder %s2868_s27, 0  ;;  %s2454_s22 = int_to_ptr.vmem [resolvable:$true] %s544_s22 }
  0x86   : > { %s2450_s13 = scalar_lea.hbm %s2884_s2, %s2883_s7  ;;  %s2014_s6 = scalar_lea.hbm %s2884_s2, 2048 }
  0x87   : > { %s2010_s25 = scalar_lea.hbm %s2450_s13, 512  ;;  %p2015_p7 = scmp.lt.u32.totalorder %s2450_s13, %s2884_s2 }
  0x88   : > { %p2011_p6 = scmp.ne.s32.totalorder %s2450_s13, %s2010_s25  ;;  %p2016_p10 = scmp.lt.u32.totalorder %s2014_s6, %s2010_s25 }
  0x89   : > { %p2018_p12 = scmp.lt.u32.totalorder %s2010_s25, %s2450_s13 }
  0x8a   : > { %p2012_p2 = pnand %p2011_p6, %p2886_p9  ;;  %p2017_p11 = por %p2016_p10, %p2015_p7 }
  0x8c   : > { %p2013_p4 = pneg %p2012_p2  ;;  %p2019_p0 = por %p2018_p12, %p2017_p11 }
  0x8e   : > { %p2020_p1 = pnand %p2019_p0, %p2013_p4 }
  0x90   : > { %2023 = shalt.err (!%p2020_p1)
}
  0x91   : > { %s2024_s0 = scalar_lea.vmem %s2454_s22, 512  ;;  %s2185_s24 = smov [#allocation6]  }
  0x92   : > { %p2025_p5 = scmp.ne.s32.totalorder %s2454_s22, %s2024_s0  ;;  %s2028_s14 = sshll.u32 %s2185_s24, 4  ;;  %s2029_s14 = int_to_ptr.vmem [resolvable:$false] %s2028_s14 }
  0x93   : > { %s2030_s10 = scalar_lea.vmem %s2029_s14, 1024  ;;  %p2031_p13 = scmp.lt.s32.totalorder %s2454_s22, %s2029_s14 }
  0x94   : > { %p2026_p3 = pnand %p2025_p5, %p2886_p9  ;;  %p2032_p6 = scmp.lt.s32.totalorder %s2030_s10, %s2024_s0 }
  0x96   : > { %p2027_p8 = pneg %p2026_p3  ;;  %p2033_p2 = por %p2032_p6, %p2031_p13 }
  0x98   : > { %p2034_p7 = pnand %p2033_p2, %p2027_p8 }
  0x9a   : > { %2037 = shalt.err (!%p2034_p7)
}
  0x9b   : > { %1802 = dma.hbm_to_vmem [thread:$0]  (%p2886_p9), %s2450_s13, 512, %s2454_s22, %s2456_s5, %s2182_s15, %s2183_s23, %s2184_s29  }
  0x9c PF: > { %p2887_p4 = scmp.ne.s32.totalorder %s2876_s9, 0 }
  0x9d   : > { %s2486_s3 = sand.u32 (!%p2887_p4), 1, %s2152_s30   ;;  %p2888_p10 = scmp.ne.s32.totalorder (!%p2887_p4), %s2870_s28, 0 }
  0x9e   : > { %580 = sbr.rel (%p2887_p4) target bundleno = 1060 (0x424), region = 91  ;;  %s2489_s25 = sshll.u32 (!%p2887_p4), %s2486_s3, 5 }
  0x9f   : > { %s583_s27 = scalar_lea.sflag (!%p2887_p4), [#allocation3], %s2486_s3  ;;  %s2493_s12 = scalar_lea.vmem (!%p2887_p4), [#allocation2], %s2489_s25 }
  0xa5   : > { %2127 = dma.done.wait (%p2888_p10), %s583_s27, 512  }
  0xa6   : > { %2129 = vsyncadd (%p2888_p10), %s583_s27, 4294966784  ;;  %s1691_s9 = sshll.u32 %s2486_s3, 6  ;;  %s598_s15 = sand.u32 1, %s2312_s21  }
  0xa7   : > { %s2501_s23 = scalar_lea.vmem [#allocation5], %s1691_s9  ;;  %s599_s29 = scalar_lea.sflag [#allocation7], %s598_s15 }
  0xa8   : > { %s602_s13 = scalar_lea.vmem [#allocation6], %s2489_s25 }
  0xa9   : > { %2131 = dma.done.wait (%p2888_p10), %s599_s29, 512  }
  0xaa   : > { %2133 = vsyncadd (%p2888_p10), %s599_s29, 4294966784  ;;  %p2889_p9 = scmp.eq.s32.totalorder %s2312_s21, 0 }
  0xac   : > { %2135 = dma.done.wait (%p2889_p9), [#allocation7], 256   ;;  %p2890_p11 = pmov %p2889_p9 }
  0xad   : > { %p686_p12 = scmp.lt.s32.totalorder %s2164_s17, 1  ;;  %p688_p0 = scmp.lt.s32.totalorder %s2160_s16, 1  ;;  %v2186_v8 = vmov 0.0   ;;  %v2187_v9 = vmov 0   ;;  %v719_v10 = vld [vmem:[%s602_s13 + $0x8] sm:$0xff]  ;;  %v721_v11 = vld [vmem:[%s602_s13 + $0x18] sm:$0xff] }
  0xae   : > { %2137 = vsyncadd (%p2890_p11), [#allocation7], 4294967040  ;;  %937 = vmatprep.mubr.f32.mxu1 %v2186_v8  ;;  %827 = vmatprep.mubr.f32.mxu0 %v2186_v8  ;;  %v718_v12 = vld [vmem:[%s602_s13] sm:$0xff]  ;;  %v1751_v13 = vpack.c.bf16 %v721_v11, %v719_v10  ;;  %v720_v14 = vld [vmem:[%s602_s13 + $0x10] sm:$0xff]  ;;  %s2891_s4 = sld [smem:[#allocation28_spill]]  ;;  %s2892_s8 = sld [smem:[#allocation32_spill]] }
  0xaf   : > { %s687_s28 = scalar_select %p686_p12, %s2164_s17, 1  ;;  %1903 = vset.pattern.permute.xlu0 %v2187_v9  ;;  %1929 = vset.pattern.permute.xlu1 %v2187_v9  ;;  %v1753_v15 = vpack.c.bf16 %v720_v14, %v718_v12  ;;  %v852_v20 = vld [vmem:[#allocation8] sm:$0xff]  ;;  %vm866_vm0 = vcmask 130048   ;;  %v853_v22 = vld [vmem:[#allocation8 + $0x8] sm:$0xff]  ;;  %v713_v24 = vld [vmem:[%s2501_s23 + $0x18] sm:$0xff]  ;;  %vm750_vm1 = vcmask 261120  }
  0xb0   : > { %s689_s22 = scalar_select %p688_p0, %s2160_s16, 1  ;;  %1752 = vmatprep.subr.bf16.mxu1 %v1751_v13  ;;  %v711_v23 = vld [vmem:[%s2501_s23 + $0x8] sm:$0xff]  ;;  %v710_v25 = vld [vmem:[%s2501_s23] sm:$0xff]  ;;  %v712_v27 = vld [vmem:[%s2501_s23 + $0x10] sm:$0xff]  ;;  %vm1061_vm2 = vcmask 7168   ;;  %vm1078_vm3 = vcmask 1039360  }
  0xb1   : > { %s1697_s21 = sshll.u32 %s687_s28, 2  ;;  %1754 = vmatpush1.bf16.msra.mxu1 %v1753_v15  ;;  %v1743_v26 = vpack.c.bf16 %v713_v24, %v711_v23  ;;  %v1745_v28 = vpack.c.bf16 %v712_v27, %v710_v25  ;;  %v715_v29 = vld [vmem:[%s2501_s23 + $0x28] sm:$0xff]  ;;  %v717_v30 = vld [vmem:[%s2501_s23 + $0x38] sm:$0xff]  ;;  %v714_v32 = vld [vmem:[%s2501_s23 + $0x20] sm:$0xff]  ;;  %s2893_s29 = sld [smem:[#allocation29_spill]]  ;;  %vm1123_vm4 = vcmask 392192  }
  0xb2   : > { %s1696_s5 = sshll.u32 %s689_s22, 1  ;;  %v1747_v31 = vpack.c.bf16 %v717_v30, %v715_v29  ;;  %v716_v33 = vld [vmem:[%s2501_s23 + $0x30] sm:$0xff]  ;;  %v2552_v37 = vld [vmem:[%s2493_s12] sm:$0xff]  ;;  %v2556_v40 = vld [vmem:[%s2493_s12 + $0x8] sm:$0xff]  ;;  %s2189_s10 = smov 127  }
  0xb3   : > { %s2520_s26 = sadd.s32 %s1697_s21, %s1696_s5  ;;  %1744 = vmatprep.subr.bf16.mxu0 %v1743_v26  ;;  %v1749_v34 = vpack.c.bf16 %v716_v33, %v714_v32  ;;  %s2895_s21 = sld [smem:[#allocation27_spill]]  ;;  %v2578_v47 = vld [vmem:[%s2493_s12 + $0x10] sm:$0xff]  ;;  %v2582_v50 = vld [vmem:[%s2493_s12 + $0x18] sm:$0xff] }
  0xb4   : > { %s1698_s6 = sshll.u32 %s2520_s26, 3  ;;  %v854_v18 = vld [vmem:[%s2892_s8] sm:$0xff]  ;;  %v855_v21 = vld [vmem:[%s2892_s8 + $0x8] sm:$0xff]  ;;  %1706 = vmatmul.mubr.msk.f32.vlgmr.msra.gmra.mrb[0].mxu1 %vm866_vm0, %v852_v20  ;;  %1746 = vmatpush1.bf16.msra.mxu0 %v1745_v28  ;;  %s2188_s12 = smov 1  }
  0xb5   : > { %s703_s0 = scalar_lea.vmem %s2891_s4, %s1698_s6  ;;  %858 = vperm.xlu0 %1903, %v854_v18   ;;  %943 = vmatprep.mubr.f32.mxu1 %v2186_v8  ;;  %s2896_s15 = sld [smem:[#allocation30_spill]] }
  0xb6   : > { %v956_v16 = vld [vmem:[%s703_s0] sm:$0xff]  ;;  %v957_v17 = vld [vmem:[%s703_s0 + $0x8] sm:$0xff]  ;;  %1748 = vmatprep.subr.bf16.mxu0 %v1747_v31  ;;  %s2560_s23 = scalar_select %p688_p0, 1, 0 }
  0xb7   : > { %v1755_v19 = vpack.c.bf16 %v957_v17, %v956_v16  ;;  %s2894_s13 = smov %s2893_s29  ;;  %v722_v36 = vld [vmem:[%s2893_s29] sm:$0xff]  ;;  %s2190_s29 = smov 126  }
  0xb8   : > { %1707 = vmatmul.mubr.msk.f32.gmra.mrb[2].mxu1 %vm866_vm0, %v853_v22  ;;  %1750 = vmatpush1.bf16.msra.mxu0 %v1749_v34  ;;  %v723_v44 = vld [vmem:[%s2894_s13 + $0x8] sm:$0xff]  ;;  %s1042_s26 = scvt.s32.f32 %s2560_s23  ;;  %v724_v55 = vld [vmem:[%s2894_s13 + $0x10] sm:$0xff]  ;;  %v725_v5 = vld [vmem:[%s2894_s13 + $0x18] sm:$0xff]  ;;  %p1037_p1 = scmp.gt.s32.totalorder %s2160_s16, 0 }
  0xb9   : > { %1756 = vmatprep.subr.bf16.mxu1 %v1755_v19  ;;  %863 = vperm.xlu0 %1903, %v855_v21   ;;  %s694_s5 = scalar_lea.vmem %s2895_s21, %s1698_s6  ;;  %s2898_s21 = sld [smem:[#allocation34_spill]] }
  0xba   : > { %1758 = vmatpush3.bf16.msra.mxu1 %v1755_v19  ;;  %1740 = vmatprep.mubr.msk.f32.mxu1 %vm866_vm0, %v852_v20  ;;  %v955_v53 = vld [vmem:[%s694_s5 + $0x8] sm:$0xff]  ;;  %v954_v57 = vld [vmem:[%s694_s5] sm:$0xff]  ;;  %v1046_v62 = vstv %s1042_s26  ;;  %s1038_s0 = scalar_select %p1037_p1, 1, 0 }
  0xbb   : > { %1702 = vmatmul.mubr.msk.f32.vlgmr.msra.gmra.mrb[0].mxu0 %vm750_vm1, %v722_v36  ;;  %s2897_s23 = smov %s2896_s15  ;;  %v729_v12 = vld [vmem:[%s2896_s15 + $0x18] sm:$0xff]  ;;  %s2900_s27 = sld [smem:[#allocation33_spill]] }
  0xbc   : > { %833 = vmatprep.mubr.f32.mxu0 %v2186_v8  ;;  %v727_v14 = vld [vmem:[%s2897_s23 + $0x8] sm:$0xff]  ;;  %v728_v18 = vld [vmem:[%s2897_s23 + $0x10] sm:$0xff]  ;;  %v726_v20 = vld [vmem:[%s2897_s23] sm:$0xff]  ;;  %s1039_s24 = scvt.s32.f32 %s1038_s0  ;;  %s2901_s26 = sld [smem:[#allocation35_spill]] }
  0xbd   : > { %1741 = vmatmul.mubr.msk.f32.vlgmr.msra.gmra.mrb[4].mxu1 %vm866_vm0, %v853_v22  ;;  %s1724_s15 = sshll.u32 %s2160_s16, 1  ;;  %s675_s22 = scalar_lea.vmem [#allocation9], %s2489_s25 }
  0xbe   : > { %1369 = vmatprep.mubr.f32.mxu1 %v2186_v8  ;;  %v1043_v25 = vstv %s1039_s24  ;;  %s1431_s5 = sshll.u32 %s675_s22, 4  ;;  %s2902_s0 = sld [smem:[#allocation37_spill]]  ;;  %s2699_s5 = int_to_ptr.vmem [resolvable:$true] %s1431_s5 }
  0xbf   : > { %1703 = vmatmul.mubr.msk.f32.gmra.mrb[2].mxu0 %vm750_vm1, %v723_v44  ;;  %v1102_v13 = vld [vmem:[%s2898_s21 + $0x18] sm:$0xff]  ;;  %v1100_v15 = vld [vmem:[%s2898_s21 + $0x8] sm:$0xff]  ;;  %v1101_v19 = vld [vmem:[%s2898_s21 + $0x10] sm:$0xff]  ;;  %s2903_s24 = sld [smem:[#allocation21_spill]]  ;;  %s2191_s9 = smov [#allocation9]  }
  0xc0   : > { %839 = vmatprep.mubr.f32.mxu0 %v2186_v8  ;;  %v1099_v21 = vld [vmem:[%s2898_s21] sm:$0xff] }
  0xc3   : > { %1704 = vmatmul.mubr.msk.f32.gmra.mrb[4].mxu0 %vm750_vm1, %v724_v55 }
  0xc4   : > { %845 = vmatprep.mubr.f32.mxu0 %v2186_v8 }
  0xc5   : > { %p2904_p3 = scmp.ne.s32.totalorder %s2903_s24, 0 }
  0xc7   : > { %1705 = vmatmul.mubr.msk.f32.gmra.mrb[6].mxu0 %vm750_vm1, %v725_v5 }
  0xc8   : > { %1200 = vmatprep.mubr.f32.mxu0 %v2186_v8 }
 0x134   : > { %v859_v35 = vpop.permute.xlu0 %858 }
 0x138   : > { %v864_v45 = vpop.permute.xlu0 %863 }
 0x187   : > { %v939_v38 = vpop.f32.mrb[0].mxu1 }
 0x188   : > { %v940_v39 = vadd.f32 %v939_v38, %v859_v35  ;;  %v941_v41 = vpop.f32.mrb[1].mxu1 }
 0x189   : > { %v942_v42 = vadd.f32 %v941_v41, %v859_v35 }
 0x18a   : > { %v2564_v43 = vadd.f32 %v940_v39, %v2552_v37 }
 0x18b   : > { %v2575_v46 = vadd.f32 %v942_v42, %v2556_v40  ;;  %v945_v48 = vpop.f32.mrb[2].mxu1 }
 0x18c   : > { %v946_v49 = vadd.f32 %v945_v48, %v864_v45  ;;  %v947_v51 = vpop.f32.mrb[3].mxu1 }
 0x18d   : > { %v948_v52 = vadd.f32 %v947_v51, %v864_v45  ;;  %v1904_v54 = vpack.i.bf16 %v2575_v46, %v2564_v43 }
 0x18e   : > { %v2592_v56 = vadd.f32 %v946_v49, %v2578_v47 }
 0x18f   : > { %v2595_v58 = vadd.f32 %v948_v52, %v2582_v50  ;;  %1905 = vrot.lane.b32.xlu1 %v1904_v54, %s2188_s12 }
 0x190   : > { %v1742_v59 = vpop.f32.mrb[4].mxu1  ;;  %v1765_v60 = vpack.c.bf16 %v2592_v56, %v2564_v43  ;;  %v1924_v0 = vpack.i.bf16 %v2592_v56, %v2564_v43  ;;  %v1097_v43 = vld [vmem:[%s2900_s27 + $0x10] sm:$0xff] }
 0x191   : > { %v1034_v61 = vadd.f32 %v1742_v59, %v955_v53  ;;  %v1024_v63 = vpop.f32.mrb[5].mxu1  ;;  %v1914_v2 = vpack.i.bf16 %v2595_v58, %v2575_v46  ;;  %v1909_v3 = vpack.i.bf16 %v2595_v58, %v2592_v56  ;;  %v1763_v4 = vpack.c.bf16 %v2595_v58, %v2575_v46  ;;  %v1096_v46 = vld [vmem:[%s2900_s27 + $0x8] sm:$0xff]  ;;  %v1098_v56 = vld [vmem:[%s2900_s27 + $0x18] sm:$0xff] }
 0x192   : > { %v1033_v1 = vadd.f32 %v1024_v63, %v954_v57  ;;  %v1095_v63 = vld [vmem:[%s2900_s27] sm:$0xff] }
 0x193   : > { %v1036_v6 = vadd.f32 %v1034_v61, %v864_v45  ;;  %1915 = vrot.lane.b32.xlu0 %v1914_v2, %s2189_s10  ;;  %1910 = vrot.lane.b32.xlu1 %v1909_v3, %s2188_s12  ;;  %s2899_s12 = sld [smem:[#allocation36_spill]] }
 0x194   : > { %v1035_v7 = vadd.f32 %v1033_v1, %v859_v35 }
 0x195   : > { %v1048_v9 = vmul.f32 %v1046_v62, %v1036_v6  ;;  %v1045_v30 = vmul.f32 %v1043_v25, %v1036_v6 }
 0x196   : > { %v1047_v10 = vmul.f32 %v1046_v62, %v1035_v7  ;;  %v1044_v31 = vmul.f32 %v1043_v25, %v1035_v7 }
 0x197   : > { %1925 = vrot.lane.b32.xlu0 %v1924_v0, %s2189_s10  ;;  %s2038_s10 = scalar_lea.vmem %s2699_s5, 512 }
 0x198   : > { %v1919_v11 = vpack.i.bf16 %v1048_v9, %v1047_v10  ;;  %p2039_p5 = scmp.ne.s32.totalorder %s2699_s5, %s2038_s10 }
 0x199   : > { %v1270_v16 = vld [vmem:[%s2899_s12 + $0x8] sm:$0xff]  ;;  %v1272_v17 = vld [vmem:[%s2899_s12 + $0x18] sm:$0xff]  ;;  %v1269_v22 = vld [vmem:[%s2899_s12] sm:$0xff] }
 0x19a   : > { %1920 = vrot.lane.b32.xlu1 %v1919_v11, %s2190_s29  ;;  %v1271_v23 = vld [vmem:[%s2899_s12 + $0x10] sm:$0xff]  ;;  %s1725_s29 = sshll.u32 %s2164_s17, 3  ;;  %s2704_s17 = scalar_lea.vmem [#allocation10], %s2489_s25 }
 0x19b   : > { %747 = vperm.xlu0 %1903, %v729_v12   ;;  %s2694_s28 = sadd.s32 %s1725_s29, %s1724_s15  ;;  %s1449_s11 = sshll.u32 %s2704_s17, 4  ;;  %s2715_s11 = int_to_ptr.vmem [resolvable:$true] %s1449_s11 }
 0x19c   : > { %s2848_s16 = sshll.u32 %s2694_s28, 7  ;;  %s1411_s25 = scalar_lea.sflag [#allocation4], %s2486_s3 }
 0x19d   : > { %s2712_s14 = scalar_lea.hbm %s2902_s0, %s2848_s16  ;;  %p2040_p8 = pnand %p2039_p5, %p2904_p3 }
 0x19e   : > { %742 = vperm.xlu1 %1929, %v728_v18   ;;  %s2042_s15 = sshll.u32 %s2191_s9, 4  ;;  %s2043_s15 = int_to_ptr.vmem [resolvable:$false] %s2042_s15 }
 0x19f   : > { %1120 = vperm.xlu0 %1903, %v1102_v13   ;;  %p2041_p13 = pneg %p2040_p8  ;;  %s2044_s29 = scalar_lea.vmem %s2043_s15, 1024 }
 0x1a0   : > { %p2045_p6 = scmp.lt.s32.totalorder %s2699_s5, %s2043_s15  ;;  %p2046_p2 = scmp.lt.s32.totalorder %s2044_s29, %s2038_s10 }
 0x1a2   : > { %1115 = vperm.xlu1 %1929, %v1101_v19   ;;  %p2047_p7 = por %p2046_p2, %p2045_p6 }
 0x1a3   : > { %737 = vperm.xlu0 %1903, %v727_v14  }
 0x1a4   : > { %p2048_p4 = pnand %p2047_p7, %p2041_p13 }
 0x1a6   : > { %732 = vperm.xlu1 %1929, %v726_v20  }
 0x1a7   : > { %1110 = vperm.xlu0 %1903, %v1100_v15  }
 0x1aa   : > { %1105 = vperm.xlu1 %1929, %v1099_v21  }
 0x1ab   : > { %1280 = vperm.xlu0 %1903, %v1270_v16  }
 0x1ae   : > { %1275 = vperm.xlu1 %1929, %v1269_v22  }
 0x1af   : > { %1290 = vperm.xlu0 %1903, %v1272_v17  }
 0x1b2   : > { %1285 = vperm.xlu1 %1929, %v1271_v23  }
 0x201   : > { %v1906_v24 = vpop.permute.xlu1 %1905 }
 0x202   : > { %v1908_v26 = vunpack.i.h.bf16 %v1906_v24  ;;  %v1907_v27 = vunpack.i.l.bf16 %v1906_v24 }
 0x204   : > { %v1068_v34 = vsel %vm1061_vm2, %v1044_v31, %v1907_v27  ;;  %v1062_v36 = vsel %vm1061_vm2, %v1907_v27, %v1908_v26 }
 0x205   : > { %v1916_v28 = vpop.permute.xlu0 %1915  ;;  %v1911_v29 = vpop.permute.xlu1 %1910 }
 0x206   : > { %v1913_v32 = vunpack.i.h.bf16 %v1911_v29  ;;  %v1912_v33 = vunpack.i.l.bf16 %v1911_v29  ;;  %v1918_v49 = vunpack.i.h.bf16 %v1916_v28  ;;  %v1917_v51 = vunpack.i.l.bf16 %v1916_v28 }
 0x208   : > { %v1069_v35 = vsel %vm1061_vm2, %v1045_v30, %v1912_v33  ;;  %v1063_v38 = vsel %vm1061_vm2, %v1912_v33, %v1913_v32 }
 0x209   : > { %v1761_v39 = vpack.c.bf16 %v1069_v35, %v1068_v34  ;;  %v1926_v41 = vpop.permute.xlu0 %1925  ;;  %v1759_v42 = vpack.c.bf16 %v1063_v38, %v1062_v36 }
 0x20a   : > { %v1928_v44 = vunpack.i.h.bf16 %v1926_v41  ;;  %v1927_v45 = vunpack.i.l.bf16 %v1926_v41 }
 0x20b   : > { %1760 = vmatprep.subr.bf16.mxu0 %v1759_v42 }
 0x20c   : > { %v1921_v48 = vpop.permute.xlu1 %1920  ;;  %1762 = vmatpush1.bf16.msra.mxu0 %v1761_v39  ;;  %v1080_v57 = vsel %vm1078_vm3, %v1928_v44, %v1918_v49  ;;  %v1079_v59 = vsel %vm1078_vm3, %v1927_v45, %v1917_v51 }
 0x20d   : > { %v1923_v52 = vunpack.i.h.bf16 %v1921_v48  ;;  %v1922_v53 = vunpack.i.l.bf16 %v1921_v48  ;;  %1764 = vmatprep.subr.bf16.mxu0 %v1763_v4  ;;  %v1769_v62 = vpack.c.bf16 %v1080_v57, %v1079_v59 }
 0x20f   : > { %v1093_v54 = vsel %vm1078_vm3, %v1917_v51, %v1922_v53  ;;  %v1094_v55 = vsel %vm1078_vm3, %v1918_v49, %v1923_v52 }
 0x210   : > { %v1767_v61 = vpack.c.bf16 %v1094_v55, %v1093_v54  ;;  %1766 = vmatpush1.bf16.msra.mxu0 %v1765_v60 }
 0x212   : > { %1768 = vmatprep.subr.bf16.mxu0 %v1767_v61 }
 0x214   : > { %1770 = vmatpush1.bf16.msra.mxu0 %v1769_v62  ;;  %v1265_v62 = vld [vmem:[%s2901_s26] sm:$0xff] }
 0x217   : > { %1710 = vmatmul.mubr.msk.f32.vlgmr.msra.gmra.mrb[0].mxu0 %vm1123_vm4, %v1095_v63  ;;  %v1266_v63 = vld [vmem:[%s2901_s26 + $0x8] sm:$0xff] }
 0x218   : > { %1206 = vmatprep.mubr.f32.mxu0 %v2186_v8 }
 0x21a   : > { %v748_v60 = vpop.permute.xlu0 %747 }
 0x21b   : > { %1711 = vmatmul.mubr.msk.f32.gmra.mrb[2].mxu0 %vm1123_vm4, %v1096_v46  ;;  %v1267_v46 = vld [vmem:[%s2901_s26 + $0x10] sm:$0xff] }
 0x21c   : > { %1212 = vmatprep.mubr.f32.mxu0 %v2186_v8 }
 0x21d   : > { %v743_v58 = vpop.permute.xlu1 %742 }
 0x21e   : > { %v1121_v6 = vpop.permute.xlu0 %1120 }
 0x21f   : > { %1712 = vmatmul.mubr.msk.f32.gmra.mrb[4].mxu0 %vm1123_vm4, %v1097_v43  ;;  %v1787_v13 = vadd.f32 %v1121_v6, %v748_v60  ;;  %v1268_v43 = vld [vmem:[%s2901_s26 + $0x18] sm:$0xff] }
 0x220   : > { %1218 = vmatprep.mubr.f32.mxu0 %v2186_v8 }
 0x221   : > { %v1116_v1 = vpop.permute.xlu1 %1115 }
 0x222   : > { %v1783_v4 = vadd.f32 %v1116_v1, %v743_v58  ;;  %v738_v15 = vpop.permute.xlu0 %737 }
 0x223   : > { %1713 = vmatmul.mubr.msk.f32.gmra.mrb[6].mxu0 %vm1123_vm4, %v1098_v56 }
 0x225   : > { %v733_v7 = vpop.permute.xlu1 %732 }
 0x226   : > { %v1111_v25 = vpop.permute.xlu0 %1110 }
 0x227   : > { %v1779_v28 = vadd.f32 %v1111_v25, %v738_v15 }
 0x229   : > { %v1106_v18 = vpop.permute.xlu1 %1105 }
 0x22a   : > { %v1775_v23 = vadd.f32 %v1106_v18, %v733_v7 }
 0x22d   : > { %v1276_v56 = vpop.permute.xlu1 %1275 }
 0x2ea   : > { %v1202_v0 = vpop.f32.mrb[0].mxu0 }
 0x2eb   : > { %v1204_v2 = vpop.f32.mrb[1].mxu0  ;;  %v1776_v26 = vadd.f32 %v1775_v23, %v1202_v0 }
 0x2ec   : > { %v1778_v27 = vadd.f32 %v1775_v23, %v1204_v2 }
 0x2ee   : > { %v1208_v3 = vpop.f32.mrb[2].mxu0 }
 0x2ef   : > { %v1210_v5 = vpop.f32.mrb[3].mxu0  ;;  %v1780_v31 = vadd.f32 %v1779_v28, %v1208_v3  ;;  %v1281_v3 = vpop.permute.xlu0 %1280 }
 0x2f0   : > { %v1782_v33 = vadd.f32 %v1779_v28, %v1210_v5 }
 0x2f2   : > { %v1214_v9 = vpop.f32.mrb[4].mxu0 }
 0x2f3   : > { %v1784_v10 = vadd.f32 %v1783_v4, %v1214_v9  ;;  %v1216_v11 = vpop.f32.mrb[5].mxu0 }
 0x2f4   : > { %v1786_v12 = vadd.f32 %v1783_v4, %v1216_v11  ;;  %v1286_v11 = vpop.permute.xlu1 %1285 }
 0x2f5   : > { %v1714_v14 = vmul.f32 -1.442695, %v1784_v10 }
 0x2f6   : > { %v1715_v16 = vmul.f32 -1.442695, %v1786_v12  ;;  %v1220_v17 = vpop.f32.mrb[6].mxu0 }
 0x2f7   : > { %1930 = vpow2.f32 %v1714_v14  ;;  %v1788_v19 = vadd.f32 %v1787_v13, %v1220_v17  ;;  %v1222_v20 = vpop.f32.mrb[7].mxu0 }
 0x2f8   : > { %1932 = vpow2.f32 %v1715_v16  ;;  %v1790_v21 = vadd.f32 %v1787_v13, %v1222_v20  ;;  %v1291_v16 = vpop.permute.xlu0 %1290 }
 0x2f9   : > { %v1716_v22 = vmul.f32 -1.442695, %v1788_v19 }
 0x2fa   : > { %v1717_v24 = vmul.f32 -1.442695, %v1790_v21 }
 0x2fb   : > { %1934 = vpow2.f32 %v1716_v22 }
 0x2fc   : > { %1936 = vpow2.f32 %v1717_v24 }
 0x2fd   : > { %1938 = vtanh.f32 %v1776_v26 }
 0x2fe   : > { %1940 = vtanh.f32 %v1778_v27 }
 0x301   : > { %v1931_v29 = vpop.eup %1930 }
 0x302   : > { %v1933_v30 = vpop.eup %1932  ;;  %v1249_v32 = vadd.f32 1.0, %v1931_v29 }
 0x303   : > { %v1250_v34 = vadd.f32 1.0, %v1933_v30 }
 0x304   : > { %1942 = vrcp.f32 %v1249_v32 }
 0x305   : > { %v1935_v35 = vpop.eup %1934  ;;  %1944 = vrcp.f32 %v1250_v34 }
 0x306   : > { %v1937_v36 = vpop.eup %1936  ;;  %1946 = vtanh.f32 %v1780_v31  ;;  %v1251_v38 = vadd.f32 1.0, %v1935_v35 }
 0x307   : > { %1948 = vtanh.f32 %v1782_v33  ;;  %v1252_v39 = vadd.f32 1.0, %v1937_v36  ;;  %v1939_v41 = vpop.eup %1938 }
 0x308   : > { %1950 = vrcp.f32 %v1251_v38  ;;  %v1941_v42 = vpop.eup %1940 }
 0x309   : > { %1952 = vrcp.f32 %v1252_v39 }
 0x30e   : > { %v1943_v44 = vpop.eup %1942 }
 0x30f   : > { %v1945_v45 = vpop.eup %1944  ;;  %v1261_v48 = vmul.f32 %v1943_v44, %v1939_v41 }
 0x310   : > { %v1947_v49 = vpop.eup %1946  ;;  %v1262_v51 = vmul.f32 %v1945_v45, %v1941_v42 }
 0x311   : > { %v1949_v52 = vpop.eup %1948 }
 0x312   : > { %v1951_v53 = vpop.eup %1950 }
 0x313   : > { %v1953_v54 = vpop.eup %1952  ;;  %v1263_v55 = vmul.f32 %v1951_v53, %v1947_v49 }
 0x314   : > { %v1264_v57 = vmul.f32 %v1953_v54, %v1949_v52 }
 0x315   : > { %v1773_v59 = vpack.c.bf16 %v1263_v55, %v1261_v48 }
 0x316   : > { %v1771_v61 = vpack.c.bf16 %v1264_v57, %v1262_v51 }
 0x318   : > { %1772 = vmatprep.subr.bf16.mxu1 %v1771_v61 }
 0x319   : > { %1774 = vmatpush1.bf16.msra.mxu1 %v1773_v59 }
 0x31c   : > { %1718 = vmatmul.mubr.msk.f32.vlgmr.msra.gmra.mrb[6].mxu1 %vm866_vm0, %v1265_v62 }
 0x31d   : > { %1375 = vmatprep.mubr.f32.mxu1 %v2186_v8 }
 0x320   : > { %1719 = vmatmul.mubr.msk.f32.gmra.mrb[8].mxu1 %vm866_vm0, %v1266_v63 }
 0x321   : > { %1381 = vmatprep.mubr.f32.mxu1 %v2186_v8 }
 0x324   : > { %1720 = vmatmul.mubr.msk.f32.gmra.mrb[10].mxu1 %vm866_vm0, %v1267_v46 }
 0x325   : > { %1387 = vmatprep.mubr.f32.mxu1 %v2186_v8 }
 0x328   : > { %1721 = vmatmul.mubr.msk.f32.gmra.mrb[12].mxu1 %vm866_vm0, %v1268_v43 }
 0x3ef   : > { %v1371_v58 = vpop.f32.mrb[6].mxu1 }
 0x3f0   : > { %v1372_v60 = vadd.f32 %v1371_v58, %v1276_v56  ;;  %v1373_v0 = vpop.f32.mrb[7].mxu1 }
 0x3f1   : > { %v1374_v1 = vadd.f32 %v1373_v0, %v1276_v56 }
 0x3f2   : > { %v1394_v2 = vadd.f32 %v1372_v60, %v2552_v37 }
 0x3f3   : > { %v1395_v8 = vadd.f32 %v1374_v1, %v2556_v40  ;;  %v1377_v4 = vpop.f32.mrb[8].mxu1 }
 0x3f4   : > { %v1398_v5 = vmul.f32 0.70710677, %v1394_v2  ;;  %v1378_v6 = vadd.f32 %v1377_v4, %v1281_v3  ;;  %v1379_v7 = vpop.f32.mrb[9].mxu1 }
 0x3f5   : > { %v1399_v9 = vmul.f32 0.70710677, %v1395_v8  ;;  %v1380_v10 = vadd.f32 %v1379_v7, %v1281_v3 }
 0x3f6   : > { %1402 = vst [vmem:[%s675_s22] sm:$0xff] %v1398_v5  ;;  %v1396_v37 = vadd.f32 %v1378_v6, %v2578_v47 }
 0x3f7   : > { %1403 = vst [vmem:[%s675_s22 + $0x8] sm:$0xff] %v1399_v9  ;;  %v1397_v12 = vadd.f32 %v1380_v10, %v2582_v50  ;;  %v1383_v13 = vpop.f32.mrb[10].mxu1 }
 0x3f8   : > { %v1400_v40 = vmul.f32 0.70710677, %v1396_v37  ;;  %v1384_v14 = vadd.f32 %v1383_v13, %v1286_v11  ;;  %v1385_v15 = vpop.f32.mrb[11].mxu1 }
 0x3f9   : > { %v1401_v47 = vmul.f32 0.70710677, %v1397_v12  ;;  %v1386_v50 = vadd.f32 %v1385_v15, %v1286_v11 }
 0x3fa   : > { %1404 = vst [vmem:[%s675_s22 + $0x10] sm:$0xff] %v1400_v40  ;;  %1406 = vst [vmem:[%s2704_s17] sm:$0xff] %v1384_v14 }
 0x3fb   : > { %1405 = vst [vmem:[%s675_s22 + $0x18] sm:$0xff] %v1401_v47  ;;  %1407 = vst [vmem:[%s2704_s17 + $0x8] sm:$0xff] %v1386_v50  ;;  %v1389_v17 = vpop.f32.mrb[12].mxu1 }
 0x3fc   : > { %v1390_v18 = vadd.f32 %v1389_v17, %v1291_v16  ;;  %v1391_v19 = vpop.f32.mrb[13].mxu1 }
 0x3fd   : > { %2051 = shalt.err (!%p2048_p4)
}
 0x3fe   : > { %s2052_s22 = scalar_lea.hbm %s2712_s14, 512  ;;  %s2056_s9 = scalar_lea.hbm %s2902_s0, 2048 }
 0x3ff   : > { %p2053_p10 = scmp.ne.s32.totalorder %s2712_s14, %s2052_s22  ;;  %p2057_p12 = scmp.lt.u32.totalorder %s2712_s14, %s2902_s0 }
 0x400   : > { %p2058_p0 = scmp.lt.u32.totalorder %s2056_s9, %s2052_s22  ;;  %p2060_p5 = scmp.lt.u32.totalorder %s2052_s22, %s2712_s14 }
 0x401   : > { %p2054_p9 = pnand %p2053_p10, %p2904_p3 }
 0x402   : > { %p2059_p1 = por %p2058_p0, %p2057_p12 }
 0x403   : > { %p2055_p11 = pneg %p2054_p9 }
 0x404   : > { %p2061_p8 = por %p2060_p5, %p2059_p1 }
 0x406   : > { %p2062_p13 = pnand %p2061_p8, %p2055_p11 }
 0x408   : > { %2065 = shalt.err (!%p2062_p13)
}
 0x409   : > { %s2192_s10 = smov 256   ;;  %s2193_s16 = smov 512   ;;  %v1392_v20 = vadd.f32 %v1391_v19, %v1291_v16  ;;  %1408 = vst [vmem:[%s2704_s17 + $0x10] sm:$0xff] %v1390_v18 }
 0x40a   : > { %s2194_s29 = smov 16   ;;  %s2905_s22 = sshll.u32 %s2694_s28, 7 }
 0x40b   : > { %1807 = dma.vmem_to_hbm [thread:$0]  (%p2904_p3), %s2699_s5, 512, %s2712_s14, %s1411_s25, %s2192_s10, %s2193_s16, %s2194_s29  }
 0x40c   : > { %s2906_s9 = sld [smem:[#allocation38_spill]]  ;;  %1409 = vst [vmem:[%s2704_s17 + $0x18] sm:$0xff] %v1392_v20  ;;  %s1416_s0 = scalar_lea.sflag [#allocation11], %s2486_s3 }
 0x40d   : > { %s2066_s1 = scalar_lea.vmem %s2715_s11, 512  ;;  %s2195_s2 = smov [#allocation10]  }
 0x40e   : > { %p2067_p6 = scmp.ne.s32.totalorder %s2715_s11, %s2066_s1  ;;  %s2070_s4 = sshll.u32 %s2195_s2, 4  ;;  %s2071_s4 = int_to_ptr.vmem [resolvable:$false] %s2070_s4 }
 0x40f   : > { %s2072_s8 = scalar_lea.vmem %s2071_s4, 1024  ;;  %p2073_p4 = scmp.lt.s32.totalorder %s2715_s11, %s2071_s4 }
 0x410   : > { %p2068_p2 = pnand %p2067_p6, %p2904_p3  ;;  %p2074_p10 = scmp.lt.s32.totalorder %s2072_s8, %s2066_s1 }
 0x412   : > { %s2750_s15 = scalar_lea.hbm %s2906_s9, %s2905_s22  ;;  %p2069_p7 = pneg %p2068_p2 }
 0x413   : > { %p2075_p9 = por %p2074_p10, %p2073_p4 }
 0x415   : > { %p2076_p11 = pnand %p2075_p9, %p2069_p7 }
 0x417   : > { %2079 = shalt.err (!%p2076_p11)
}
 0x418   : > { %s2080_s28 = scalar_lea.hbm %s2750_s15, 512  ;;  %s2084_s2 = scalar_lea.hbm %s2906_s9, 2048 }
 0x419   : > { %p2081_p12 = scmp.ne.s32.totalorder %s2750_s15, %s2080_s28  ;;  %p2085_p5 = scmp.lt.u32.totalorder %s2750_s15, %s2906_s9 }
 0x41a   : > { %p2086_p8 = scmp.lt.u32.totalorder %s2084_s2, %s2080_s28  ;;  %p2088_p6 = scmp.lt.u32.totalorder %s2080_s28, %s2750_s15 }
 0x41b   : > { %p2082_p0 = pnand %p2081_p12, %p2904_p3 }
 0x41c   : > { %p2087_p13 = por %p2086_p8, %p2085_p5 }
 0x41d   : > { %p2083_p1 = pneg %p2082_p0 }
 0x41e   : > { %p2089_p2 = por %p2088_p6, %p2087_p13 }
 0x420   : > { %p2090_p7 = pnand %p2089_p2, %p2083_p1 }
 0x422   : > { %2093 = shalt.err (!%p2090_p7)
}
 0x423   : > { %1808 = dma.vmem_to_hbm [thread:$0]  (%p2904_p3), %s2715_s11, 512, %s2750_s15, %s1416_s0, %s2192_s10, %s2193_s16, %s2194_s29  }
 0x424 PF: > { %s2907_s1 = sld [smem:[#allocation17_spill]]  ;;  %s2908_s8 = sld [smem:[#allocation22_spill]] }
 0x425   : > { %p1824_p4 = scmp.ge.s32.totalorder %s2176_s20, 2 }
 0x42a   : > { %s1464_s25 = sand.u32 1, %s2907_s1   ;;  %p2909_p10 = scmp.ne.s32.totalorder %s2908_s8, 0 }
 0x42b   : > { %s1465_s22 = scalar_lea.sflag [#allocation4], %s1464_s25 }
 0x42c   : > { %p1816_p9 = pnand %p1824_p4, %p2909_p10 }
 0x42e   : > { %2139 = dma.done.wait (!%p1816_p9), %s1465_s22, 512  }
 0x42f   : > { %2141 = vsyncadd (!%p1816_p9), %s1465_s22, 4294966784  ;;  %s1474_s24 = scalar_lea.sflag [#allocation11], %s1464_s25 }
 0x430   : > { %2143 = dma.done.wait (!%p1816_p9), %s1474_s24, 512  }
 0x431   : > { %2145 = vsyncadd (!%p1816_p9), %s1474_s24, 4294966784  ;;  %s37_s20 = sadd.s32 1, %s2176_s20   ;;  %s2910_s3 = sld [smem:[#allocation18_spill]] }
 0x432   : > { %p34_p11 = scmp.ge.s32.totalorder %s37_s20, 6   ;;  %s2911_s15 = sld [smem:[#allocation23_spill]] }
 0x433   : > { %s2912_s11 = sld [smem:[#allocation19_spill]]  ;;  %s2913_s0 = sld [smem:[#allocation20_spill]] }
 0x434   : > { %s2914_s29 = smov %s2152_s30  ;;  %s2916_s16 = smov %s2168_s18 }
 0x435   : > { %s2917_s17 = smov %s2172_s19  ;;  %36 = sbr.rel (!%p34_p11) target bundleno = 27 (0x1b), region = 188 }
 0x437   : > { %s2915_s30 = smov %s2910_s3 }
 0x439   : > { %s2918_s18 = smov %s2912_s11  ;;  %s2919_s19 = smov %s2913_s0 }
 0x43c   :  { %1479 = vsyncpa [#allocation3], 1 }
 0x43d   :  { %1481 = vsyncpa [#allocation3 + $0x1], 1 }
 0x43e   :  { %1482 = vsyncpa [#allocation7], 1 }
 0x43f   :  { %1484 = vsyncpa [#allocation7 + $0x1], 1 }
 0x440   :  { %1485 = vsyncpa [#allocation4], 1 }
 0x441   :  { %1487 = vsyncpa [#allocation4 + $0x1], 1 }
 0x442   :  { %1488 = vsyncpa [#allocation11], 1 }
 0x443   :  { %1490 = vsyncpa [#allocation11 + $0x1], 1 }

</bundles_post_ra>
